<compile_context>
chip_gen: v6e
topology: v6e:2x2x1
jax: 0.10.0
libtpu: 0.0.40
codegen_flags: <defaults>
</compile_context>

<pallas_src>
import functools
import math

import jax
import jax.numpy as jnp
import numpy as np
from jax import lax
from jax.experimental import pallas as pl
from jax.experimental.pallas import tpu as pltpu


def _gaussian_hist_kernel(x_ref, o_ref, acc_ref, *, bins, vmin, delta,
                          neg_half_inv_sigma2, coef, n_valid, tile_n, needs_mask):
    k = pl.program_id(1)  # reduction axis over sample tiles ("arbitrary")

    @pl.when(k == 0)
    def _():
        acc_ref[...] = jnp.zeros_like(acc_ref)

    x = x_ref[...].astype(jnp.float32)                       # (1, tile_n): samples on lanes

    # Bin centers generated in-kernel: c_b = vmin + delta * (b + 0.5), bins on sublanes.
    bin_idx = lax.broadcasted_iota(jnp.int32, (bins, 1), 0).astype(jnp.float32)
    centers = vmin + delta * (bin_idx + 0.5)                 # (bins, 1)

    d = x - centers                                          # (bins, tile_n), fully dense
    vals = jnp.exp(d * d * neg_half_inv_sigma2)              # folded constant, EUP exp

    if needs_mask:
        # Zero contributions from padded samples (global flat index >= n_valid).
        g = pl.program_id(0) * pl.num_programs(1) + k        # global sample-tile index
        lane = lax.broadcasted_iota(jnp.int32, (1, tile_n), 1)
        valid = (g * tile_n + lane) < n_valid                # (1, tile_n), broadcasts over bins
        vals = jnp.where(valid, vals, 0.0)

    acc_ref[...] += vals                                     # deferred reduction: pure VPU add

    @pl.when(k == pl.num_programs(1) - 1)
    def _():
        # Single cross-lane reduce + single coef scale for the whole partition.
        s = jnp.sum(acc_ref[...], axis=1, keepdims=True) * coef   # (bins, 1)
        o_ref[...] = s.reshape(1, bins, 1)


def gaussian_histogram(x, *, bins, vmin, vmax, sigma, tile_n=2048, num_parts=2):
    """Pallas equivalent of GaussianHistogram.forward.

    x: (N,) float array (f32 or bf16).  Returns (bins,) float32 array.
    """
    delta = float(vmax - vmin) / float(bins)
    coef = delta / (float(sigma) * math.sqrt(2.0 * math.pi))
    neg_half_inv_sigma2 = -0.5 / (float(sigma) ** 2)

    x = jnp.asarray(x)
    in_dtype = x.dtype if x.dtype in (jnp.bfloat16, jnp.float32) else jnp.float32
    x = x.reshape(-1).astype(in_dtype)
    n = int(x.shape[0])

    num_parts = max(1, int(num_parts))

    # --- tile sizing -------------------------------------------------------
    # Lane width multiple of 128; cap so the (bins, tile_n) f32 accumulator stays
    # well inside the scoped VMEM limit on every generation (incl. v7x's 64 MiB).
    tile_n = max(128, (int(tile_n) // 128) * 128)
    while tile_n > 128 and bins * tile_n * 4 > (8 << 20):
        tile_n //= 2
    tile_n = max(128, (tile_n // 128) * 128)
    # Don't use tiles larger than needed for small inputs (keeps the parallel
    # partitions balanced and avoids pointless padding).
    per_part = -(-n // num_parts)
    tile_n = min(tile_n, max(128, -(-per_part // 128) * 128))

    n_tiles = max(1, -(-n // tile_n))
    n_tiles = -(-n_tiles // num_parts) * num_parts           # even split over parallel axis
    tiles_per_part = n_tiles // num_parts
    padded_len = n_tiles * tile_n
    needs_mask = padded_len != n

    if needs_mask:
        x = jnp.concatenate([x, jnp.zeros((padded_len - n,), in_dtype)])
    x_row = x.reshape(1, padded_len)                         # samples on the lane axis

    kernel = functools.partial(
        _gaussian_hist_kernel,
        bins=bins, vmin=float(vmin), delta=delta,
        neg_half_inv_sigma2=neg_half_inv_sigma2, coef=coef,
        n_valid=n, tile_n=tile_n, needs_mask=needs_mask,
    )

    out = pl.pallas_call(
        kernel,
        out_shape=jax.ShapeDtypeStruct((num_parts, bins, 1), jnp.float32),
        grid_spec=pltpu.PrefetchScalarGridSpec(
            num_scalar_prefetch=0,
            grid=(num_parts, tiles_per_part),
            in_specs=[
                pl.BlockSpec((1, tile_n),
                             lambda p, k: (0, p * tiles_per_part + k)),
            ],
            out_specs=pl.BlockSpec((1, bins, 1), lambda p, k: (p, 0, 0)),
            scratch_shapes=[pltpu.VMEM((bins, tile_n), jnp.float32)],
        ),
        compiler_params=pltpu.CompilerParams(
            dimension_semantics=("parallel", "arbitrary"),
        ),
    )(x_row)

    # Sum the per-part partial histograms (uses both TensorCores on v7x).
    return out[:, :, 0].sum(axis=0)


def gaussian_histogram_ref(x, *, bins, vmin, vmax, sigma):
    """float64 NumPy reference matching GaussianHistogram.forward."""
    x = np.asarray(x, np.float64).reshape(-1)
    delta = float(vmax - vmin) / float(bins)
    centers = float(vmin) + delta * (np.arange(bins, dtype=np.float64) + 0.5)
    d = x[None, :] - centers[:, None]                        # (bins, N)
    v = np.exp(-0.5 * (d / sigma) ** 2) / (sigma * np.sqrt(2.0 * np.pi)) * delta
    return v.sum(axis=1)                                     # (bins,)


if __name__ == "__main__":
    BINS = 32
    VMIN = 0.0
    VMAX = 1.0
    SIGMA = 0.05

    key = jax.random.PRNGKey(0)

    # Primary check: N = 1024 (splits evenly over the parallel axis, no padding).
    N = 1024
    x = jax.random.uniform(key, (N,), dtype=jnp.float32, minval=VMIN, maxval=VMAX)
    out = gaussian_histogram(x, bins=BINS, vmin=VMIN, vmax=VMAX, sigma=SIGMA)
    out = jax.block_until_ready(out)
    ref = gaussian_histogram_ref(np.asarray(x), bins=BINS, vmin=VMIN, vmax=VMAX, sigma=SIGMA)
    np.testing.assert_allclose(np.asarray(out, np.float64), ref, rtol=1e-4, atol=1e-5)

    # Ragged check: N not a multiple of the tile -> exercises the padded/masked path.
    N2 = 1000
    x2 = jax.random.uniform(jax.random.PRNGKey(0), (N2,), dtype=jnp.float32,
                            minval=VMIN, maxval=VMAX)
    out2 = gaussian_histogram(x2, bins=BINS, vmin=VMIN, vmax=VMAX, sigma=SIGMA)
    out2 = jax.block_until_ready(out2)
    ref2 = gaussian_histogram_ref(np.asarray(x2), bins=BINS, vmin=VMIN, vmax=VMAX, sigma=SIGMA)
    np.testing.assert_allclose(np.asarray(out2, np.float64), ref2, rtol=1e-4, atol=1e-5)

    print("KERNEL_OK")
</pallas_src>

<mosaic_0001>
module attributes {stable_mosaic.version = 11 : i64} {
  func.func @_gaussian_hist_kernel(%arg0: i32, %arg1: i32, %arg2: memref<1x512xf32, #tpu.memory_space<vmem>>, %arg3: memref<1x32x1xf32, #tpu.memory_space<vmem>>, %arg4: memref<32x512xf32, #tpu.memory_space<vmem>>) attributes {dimension_semantics = [#tpu.dimension_semantics<parallel>, #tpu.dimension_semantics<arbitrary>], iteration_bounds = array<i64: 2, 1>, scalar_prefetch = 0 : i64, scratch_operands = 1 : i64, tpu.core_type = #tpu.core_type<tc>, window_params = [{transform_indices = @transform_0, window_bounds = array<i64: 1, 512>}, {transform_indices = @transform_1, window_bounds = array<i64: 1, 32, 1>}]} {
    %c0_i32 = arith.constant 0 : i32
    %0 = arith.cmpi eq, %arg1, %c0_i32 : i32
    %1 = arith.extui %0 : i1 to i32
    %c0_i32_0 = arith.constant 0 : i32
    %2 = arith.cmpi ne, %1, %c0_i32_0 : i32
    scf.if %2 {
      %cst_11 = arith.constant 0.000000e+00 : f32
      %25 = vector.broadcast %cst_11 : f32 to vector<32x512xf32>
      %c0_12 = arith.constant 0 : index
      %c0_13 = arith.constant 0 : index
      %26 = vector.load %arg4[%c0_12, %c0_13] : memref<32x512xf32, #tpu.memory_space<vmem>>, vector<32x512xf32>
      tpu.vector_store %arg4[%c0_12, %c0_13], %25 {strides = array<i32>} : memref<32x512xf32, #tpu.memory_space<vmem>>, vector<32x512xf32>,
    } else {
    }
    %c0 = arith.constant 0 : index
    %c0_1 = arith.constant 0 : index
    %3 = vector.load %arg2[%c0, %c0_1] : memref<1x512xf32, #tpu.memory_space<vmem>>, vector<1x512xf32>
    %4 = tpu.iota {dimensions = array<i32: 0>} : vector<32x1xi32>
    %5 = arith.sitofp %4 : vector<32x1xi32> to vector<32x1xf32>
    %cst = arith.constant 5.000000e-01 : f32
    %6 = vector.broadcast %cst : f32 to vector<32x1xf32>
    %7 = arith.addf %5, %6 : vector<32x1xf32>
    %cst_2 = arith.constant 3.125000e-02 : f32
    %8 = vector.broadcast %cst_2 : f32 to vector<32x1xf32>
    %9 = arith.mulf %8, %7 : vector<32x1xf32>
    %cst_3 = arith.constant 0.000000e+00 : f32
    %10 = vector.broadcast %cst_3 : f32 to vector<32x1xf32>
    %11 = arith.addf %10, %9 : vector<32x1xf32>
    %12 = vector.broadcast %3 : vector<1x512xf32> to vector<32x512xf32>
    %13 = vector.broadcast %11 : vector<32x1xf32> to vector<32x512xf32>
    %14 = arith.subf %12, %13 : vector<32x512xf32>
    %15 = arith.mulf %14, %14 : vector<32x512xf32>
    %cst_4 = arith.constant -2.000000e+02 : f32
    %16 = vector.broadcast %cst_4 : f32 to vector<32x512xf32>
    %17 = arith.mulf %15, %16 : vector<32x512xf32>
    %18 = math.exp %17 : vector<32x512xf32>
    %c0_5 = arith.constant 0 : index
    %c0_6 = arith.constant 0 : index
    %19 = vector.load %arg4[%c0_5, %c0_6] : memref<32x512xf32, #tpu.memory_space<vmem>>, vector<32x512xf32>
    %20 = arith.addf %19, %18 : vector<32x512xf32>
    %c0_7 = arith.constant 0 : index
    %c0_8 = arith.constant 0 : index
    %21 = vector.load %arg4[%c0_7, %c0_8] : memref<32x512xf32, #tpu.memory_space<vmem>>, vector<32x512xf32>
    tpu.vector_store %arg4[%c0_7, %c0_8], %20 {strides = array<i32>} : memref<32x512xf32, #tpu.memory_space<vmem>>, vector<32x512xf32>,
    %c0_i32_9 = arith.constant 0 : i32
    %22 = arith.cmpi eq, %arg1, %c0_i32_9 : i32
    %23 = arith.extui %22 : i1 to i32
    %c0_i32_10 = arith.constant 0 : i32
    %24 = arith.cmpi ne, %23, %c0_i32_10 : i32
    scf.if %24 {
      %c0_11 = arith.constant 0 : index
      %c0_12 = arith.constant 0 : index
      %25 = vector.load %arg4[%c0_11, %c0_12] : memref<32x512xf32, #tpu.memory_space<vmem>>, vector<32x512xf32>
      %cst_13 = arith.constant dense<0.000000e+00> : vector<32xf32>
      %26 = vector.multi_reduction <add>, %25, %cst_13 [1] : vector<32x512xf32> to vector<32xf32>
      %27 = vector.shape_cast %26 : vector<32xf32> to vector<32x1xf32>
      %cst_14 = arith.constant 0.249338925 : f32
      %28 = vector.broadcast %cst_14 : f32 to vector<32x1xf32>
      %29 = arith.mulf %27, %28 : vector<32x1xf32>
      %30 = vector.shape_cast %29 : vector<32x1xf32> to vector<1x32x1xf32>
      %c0_15 = arith.constant 0 : index
      %c0_16 = arith.constant 0 : index
      %c0_17 = arith.constant 0 : index
      %31 = vector.load %arg3[%c0_15, %c0_16, %c0_17] : memref<1x32x1xf32, #tpu.memory_space<vmem>>, vector<1x32x1xf32>
      tpu.vector_store %arg3[%c0_15, %c0_16, %c0_17], %30 {strides = array<i32>} : memref<1x32x1xf32, #tpu.memory_space<vmem>>, vector<1x32x1xf32>,
    } else {
    }
    return
  }
  func.func @transform_0(%arg0: i32, %arg1: i32) -> (i32, i32) {
    %c1_i32 = arith.constant 1 : i32
    %0 = arith.muli %arg0, %c1_i32 : i32
    %1 = arith.addi %0, %arg1 : i32
    %c0_i32 = arith.constant 0 : i32
    %c0_i32_0 = arith.constant 0 : i32
    return %c0_i32, %1 : i32, i32
  }
  func.func @transform_1(%arg0: i32, %arg1: i32) -> (i32, i32, i32) {
    %c0_i32 = arith.constant 0 : i32
    %c0_i32_0 = arith.constant 0 : i32
    %c0_i32_1 = arith.constant 0 : i32
    return %arg0, %c0_i32, %c0_i32_0 : i32, i32, i32
  }
}

</mosaic_0001>

<bundles_post_ra>
// kernel: tpu_custom_call.1
= control target key start
LH: loop header
LB: loop body
LE: loop exit
PB: predicated region body
PF: predicated region fallthrough
CT: control target
= control target key end

     0   :  { %6 = vsyncpa [#allocation4], 0  ;;  %s760_s0 = inlined_call_operand.hbm [shape: f32[1,1024], index: 0, kind: input, shape index: {}]   ;;  %s761_s1 = inlined_call_operand.vmem [shape: f32[2,32,1], index: 1, kind: output, shape index: {}]  }
   0x1   :  { %8 = vsyncpa [#allocation4 + $0x1], 0  ;;  %s660_s6 = smov 0   ;;  %s662_s7 = smov 0  }
   0x2   :  { %s664_s8 = smov 0   ;;  %s666_s9 = smov 0  }
   0x3   :  { %s668_s10 = smov 0   ;;  %s670_s11 = smov 0  }
   0x4 LB: > { %s467_s12 = sadd.s32 4294967295, %s647_s11   ;;  %s26_s13 = sadd.s32 1, %s643_s10  ;;  %s647_s11 = sphi %s670_s11, %s14_s11   ;;  %s643_s10 = sphi %s668_s10, %s769_s10   ;;  %s639_s9 = sphi %s666_s9, %s768_s9   ;;  %s635_s8 = sphi %s664_s8, %s767_s8   ;;  %s631_s7 = sphi %s662_s7, %s766_s7   ;;  %s627_s6 = sphi %s660_s6, %s765_s6  }
   0x5   : > { %p28_p0 = scmp.ge.s32.totalorder %s26_s13, 2  ;;  %s35_s14 = sadd.s32 1, %s635_s8 }
   0x6   : > { %p42_p1 = scmp.ne.s32.totalorder %s635_s8, %s631_s7  ;;  %p43_p2 = scmp.eq.s32.totalorder %s647_s11, 0 }
   0x7   : > { %s771_s13 = smov (%p28_p0, %s26_s13), 0  ;;  %p48_p4 = scmp.ne.s32.totalorder %s631_s7, %s627_s6 }
   0x8   : > { %p696_p3 = por %p43_p2, %p42_p1  ;;  %s32_s16 = ssub.s32 %s643_s10, %s771_s13 }
   0x9   : > { %p49_p5 = scmp.eq.s32.totalorder %s467_s12, 0  ;;  %p33_p6 = scmp.eq.s32.totalorder %s32_s16, 0 }
   0xa   : > { %p488_p8 = scmp.lt.s32.totalorder %s647_s11, 2  ;;  %s98_s19 = sand.u32 1, %s635_s8  }
   0xb   : > { %p703_p7 = por %p49_p5, %p48_p4  ;;  %s480_s20 = sshll.u32 %s643_s10, 6 }
   0xc   : > { %s709_s18 = scalar_select %p33_p6, %s635_s8, %s35_s14  }
   0xd   : > { %s471_s21 = sshll.u32 %s98_s19, 2  ;;  %s109_s24 = scalar_lea.hbm %s760_s0, %s480_s20 }
   0xe   : > { %s102_s25 = scalar_lea.vmem [#allocation3], %s471_s21  ;;  %p718_p9 = pnand %p488_p8, %p696_p3 }
   0xf   : > { %s111_s26 = sshll.u32 %s102_s25, 4  ;;  %p474_p10 = scmp.ge.s32.totalorder %s647_s11, 1  ;;  %s112_s26 = int_to_ptr.vmem [resolvable:$true] %s111_s26 }
  0x10   : > { %p116_p11 = scmp.lt.s32.totalorder %s647_s11, 3  ;;  %s99_s28 = scalar_lea.sflag [#allocation4], %s98_s19 }
  0x11   : > { %p571_p12 = pneg %p718_p9  ;;  %s582_s29 = scalar_lea.vmem %s112_s26, 64 }
  0x12   : > { %p583_p13 = scmp.ne.s32.totalorder %s112_s26, %s582_s29  ;;  %s649_s30 = smov [#allocation3]  }
  0x13   : > { %s587_s2 = sshll.u32 %s649_s30, 4  ;;  %s588_s2 = int_to_ptr.vmem [resolvable:$false] %s587_s2 }
  0x14   : > { %p585_p0 = pnand %p583_p13, %p571_p12  ;;  %s589_s3 = scalar_lea.vmem %s588_s2, 128 }
  0x15   : > { %p590_p2 = scmp.lt.s32.totalorder %s112_s26, %s588_s2  ;;  %p591_p3 = scmp.lt.s32.totalorder %s589_s3, %s582_s29 }
  0x16   : > { %p586_p1 = pneg %p585_p0 }
  0x17   : > { %p592_p4 = por %p591_p3, %p590_p2 }
  0x19   : > { %p593_p5 = pnand %p592_p4, %p586_p1 }
  0x1b   : > { %596 = shalt.err (!%p593_p5)
}
  0x1c   : > { %487 = dma.hbm_to_vmem [thread:$0]  (!%p718_p9), %s109_s24, 64, %s112_s26, %s99_s28  }
  0x1d   : > { %p117_p6 = pnand %p474_p10, %p116_p11 }
  0x1e   : > { %s122_s4 = sand.u32 (!%p117_p6), 1, %s631_s7  }
  0x1f   : > { %120 = sbr.rel (%p117_p6) target bundleno = 231 (0xe7), region = 24  ;;  %s475_s5 = sshll.u32 (!%p117_p6), %s122_s4, 2 }
  0x20   : > { %s123_s6 = scalar_lea.sflag (!%p117_p6), [#allocation4], %s122_s4  ;;  %s126_s12 = scalar_lea.vmem (!%p117_p6), [#allocation3], %s475_s5 }
  0x24   : > { %622 = dma.done.wait (%p703_p7), %s123_s6, 64  }
  0x25   : > { %624 = vsyncadd (%p703_p7), %s123_s6, 4294967232  ;;  %v173_v0 = vlaneseq  ;;  %v172_v11 = vld [vmem:[%s126_s12] sm:$0xf]  ;;  %p147_p7 = scmp.lt.s32.totalorder %s639_s9, 1  ;;  %vm386_vm0 = vcmask 7168  }
  0x27   : > { %v174_v1 = vshrl.u32 %v173_v0, 7  ;;  %s773_s9 = smov (!%p147_p7, %s639_s9), 1 }
  0x28   : > { %s481_s14 = sshll.u32 %s773_s9, 5 }
  0x29   : > { %v176_v2 = vadd.s32 16, %v174_v1  ;;  %v197_v3 = vsub.s32 0, %v174_v1  ;;  %v201_v4 = vsub.s32 1, %v174_v1  ;;  %v205_v5 = vsub.s32 2, %v174_v1  ;;  %s151_s17 = scalar_lea.vmem %s761_s1, %s481_s14 }
  0x2a   : > { %v209_v6 = vsub.s32 3, %v174_v1  ;;  %v178_v7 = vcvt.s32.f32 %v174_v1  ;;  %v177_v8 = vadd.s32 24, %v174_v1  ;;  %v175_v9 = vadd.s32 8, %v174_v1 }
  0x2b   : > { %v180_v10 = vcvt.s32.f32 %v176_v2  ;;  %v198_v16 = vrot.slane %v172_v11, %v197_v3  ;;  %v202_v17 = vrot.slane %v172_v11, %v201_v4  ;;  %v206_v18 = vrot.slane %v172_v11, %v205_v5 }
  0x2c   : > { %v182_v12 = vadd.f32 0.5, %v178_v7  ;;  %v181_v13 = vcvt.s32.f32 %v177_v8  ;;  %v179_v14 = vcvt.s32.f32 %v175_v9  ;;  %v210_v19 = vrot.slane %v172_v11, %v209_v6 }
  0x2d   : > { %v184_v15 = vadd.f32 0.5, %v180_v10 }
  0x2e   : > { %v186_v20 = vmul.f32 0.03125, %v182_v12  ;;  %v185_v22 = vadd.f32 0.5, %v181_v13  ;;  %v183_v23 = vadd.f32 0.5, %v179_v14 }
  0x2f   : > { %v188_v21 = vmul.f32 0.03125, %v184_v15 }
  0x30   : > { %v215_v24 = vsub.f32 %v198_v16, %v186_v20  ;;  %v216_v25 = vsub.f32 %v202_v17, %v186_v20  ;;  %v217_v26 = vsub.f32 %v206_v18, %v186_v20  ;;  %v218_v27 = vsub.f32 %v210_v19, %v186_v20 }
  0x31   : > { %v223_v28 = vsub.f32 %v198_v16, %v188_v21  ;;  %v224_v29 = vsub.f32 %v202_v17, %v188_v21  ;;  %v225_v30 = vsub.f32 %v206_v18, %v188_v21  ;;  %v226_v31 = vsub.f32 %v210_v19, %v188_v21 }
  0x32   : > { %v231_v32 = vmul.f32 %v215_v24, %v215_v24  ;;  %v232_v33 = vmul.f32 %v216_v25, %v216_v25  ;;  %v233_v34 = vmul.f32 %v217_v26, %v217_v26  ;;  %v234_v35 = vmul.f32 %v218_v27, %v218_v27 }
  0x33   : > { %v239_v36 = vmul.f32 %v223_v28, %v223_v28  ;;  %v240_v37 = vmul.f32 %v224_v29, %v224_v29  ;;  %v241_v38 = vmul.f32 %v225_v30, %v225_v30  ;;  %v242_v39 = vmul.f32 %v226_v31, %v226_v31 }
  0x34   : > { %v247_v40 = vmul.f32 -200.0, %v231_v32  ;;  %v248_v41 = vmul.f32 -200.0, %v232_v33  ;;  %v249_v42 = vmul.f32 -200.0, %v233_v34  ;;  %v250_v43 = vmul.f32 -200.0, %v234_v35 }
  0x35   : > { %v255_v44 = vmul.f32 -200.0, %v239_v36  ;;  %v256_v45 = vmul.f32 -200.0, %v240_v37  ;;  %v257_v46 = vmul.f32 -200.0, %v241_v38  ;;  %v258_v47 = vmul.f32 -200.0, %v242_v39 }
  0x36   : > { %v263_v48 = vmul.f32 1.442695, %v247_v40  ;;  %v265_v53 = vmul.f32 1.442695, %v248_v41  ;;  %v189_v54 = vmul.f32 0.03125, %v185_v22  ;;  %v187_v57 = vmul.f32 0.03125, %v183_v23 }
  0x37   : > { %v279_v49 = vmul.f32 1.442695, %v255_v44  ;;  %v281_v50 = vmul.f32 1.442695, %v256_v45  ;;  %v283_v51 = vmul.f32 1.442695, %v257_v46 }
  0x38   : > { %v285_v52 = vmul.f32 1.442695, %v258_v47  ;;  %537 = vpow2.f32 %v263_v48  ;;  %v267_v55 = vmul.f32 1.442695, %v249_v42  ;;  %v269_v56 = vmul.f32 1.442695, %v250_v43 }
  0x39   : > { %539 = vpow2.f32 %v279_v49  ;;  %v227_v58 = vsub.f32 %v198_v16, %v189_v54  ;;  %v228_v59 = vsub.f32 %v202_v17, %v189_v54  ;;  %v229_v60 = vsub.f32 %v206_v18, %v189_v54 }
  0x3a   : > { %541 = vpow2.f32 %v281_v50  ;;  %v230_v61 = vsub.f32 %v210_v19, %v189_v54  ;;  %v219_v62 = vsub.f32 %v198_v16, %v187_v57  ;;  %v220_v63 = vsub.f32 %v202_v17, %v187_v57 }
  0x3b   : > { %543 = vpow2.f32 %v283_v51  ;;  %v243_v0 = vmul.f32 %v227_v58, %v227_v58  ;;  %v244_v1 = vmul.f32 %v228_v59, %v228_v59  ;;  %v245_v2 = vmul.f32 %v229_v60, %v229_v60 }
  0x3c   : > { %545 = vpow2.f32 %v285_v52  ;;  %v246_v3 = vmul.f32 %v230_v61, %v230_v61  ;;  %v221_v4 = vsub.f32 %v206_v18, %v187_v57  ;;  %v222_v5 = vsub.f32 %v210_v19, %v187_v57 }
  0x3d   : > { %547 = vpow2.f32 %v265_v53  ;;  %v259_v6 = vmul.f32 -200.0, %v243_v0  ;;  %v260_v7 = vmul.f32 -200.0, %v244_v1  ;;  %v261_v8 = vmul.f32 -200.0, %v245_v2 }
  0x3e   : > { %549 = vpow2.f32 %v267_v55  ;;  %v262_v9 = vmul.f32 -200.0, %v246_v3  ;;  %v235_v10 = vmul.f32 %v219_v62, %v219_v62  ;;  %v236_v11 = vmul.f32 %v220_v63, %v220_v63 }
  0x3f   : > { %551 = vpow2.f32 %v269_v56  ;;  %v287_v12 = vmul.f32 1.442695, %v259_v6  ;;  %v289_v13 = vmul.f32 1.442695, %v260_v7  ;;  %v291_v14 = vmul.f32 1.442695, %v261_v8 }
  0x40   : > { %v237_v15 = vmul.f32 %v221_v4, %v221_v4  ;;  %v293_v16 = vmul.f32 1.442695, %v262_v9  ;;  %v238_v17 = vmul.f32 %v222_v5, %v222_v5  ;;  %v251_v20 = vmul.f32 -200.0, %v235_v10 }
  0x41   : > { %v252_v21 = vmul.f32 -200.0, %v236_v11  ;;  %553 = vpow2.f32 %v287_v12 }
  0x42   : > { %v253_v22 = vmul.f32 -200.0, %v237_v15  ;;  %555 = vpow2.f32 %v289_v13  ;;  %v254_v18 = vmul.f32 -200.0, %v238_v17  ;;  %v271_v19 = vmul.f32 1.442695, %v251_v20 }
  0x43   : > { %v273_v23 = vmul.f32 1.442695, %v252_v21  ;;  %557 = vpow2.f32 %v291_v14 }
  0x44   : > { %v275_v24 = vmul.f32 1.442695, %v253_v22  ;;  %559 = vpow2.f32 %v293_v16  ;;  %v277_v26 = vmul.f32 1.442695, %v254_v18 }
  0x45   : > { %v538_v25 = vpop.eup %537  ;;  %561 = vpow2.f32 %v271_v19 }
  0x46   : > { %v540_v27 = vpop.eup %539  ;;  %563 = vpow2.f32 %v273_v23 }
  0x47   : > { %v542_v28 = vpop.eup %541  ;;  %565 = vpow2.f32 %v275_v24 }
  0x48   : > { %v544_v29 = vpop.eup %543  ;;  %v372_v30 = vadd.f32 %v542_v28, %v540_v27  ;;  %567 = vpow2.f32 %v277_v26 }
  0x49   : > { %v546_v31 = vpop.eup %545 }
  0x4a   : > { %v548_v32 = vpop.eup %547  ;;  %v373_v33 = vadd.f32 %v544_v29, %v372_v30 }
  0x4b   : > { %v550_v34 = vpop.eup %549  ;;  %v362_v35 = vadd.f32 %v548_v32, %v538_v25 }
  0x4c   : > { %v552_v36 = vpop.eup %551  ;;  %v374_v37 = vadd.f32 %v546_v31, %v373_v33 }
  0x4d   : > { %v363_v38 = vadd.f32 %v550_v34, %v362_v35 }
  0x4e   : > { %375 = vadd.xlane.f32.xlu1 %v374_v37  ;;  %v554_v39 = vpop.eup %553 }
  0x4f   : > { %v364_v40 = vadd.f32 %v552_v36, %v363_v38  ;;  %v556_v41 = vpop.eup %555 }
  0x50   : > { %v558_v42 = vpop.eup %557  ;;  %v377_v43 = vadd.f32 %v556_v41, %v554_v39 }
  0x51   : > { %365 = vadd.xlane.f32.xlu0 %v364_v40  ;;  %v560_v44 = vpop.eup %559 }
  0x52   : > { %v562_v45 = vpop.eup %561  ;;  %v378_v46 = vadd.f32 %v558_v42, %v377_v43 }
  0x53   : > { %v564_v47 = vpop.eup %563 }
  0x54   : > { %v566_v48 = vpop.eup %565  ;;  %v379_v49 = vadd.f32 %v560_v44, %v378_v46  ;;  %v367_v50 = vadd.f32 %v564_v47, %v562_v45 }
  0x55   : > { %v568_v51 = vpop.eup %567 }
  0x56   : > { %380 = vadd.xlane.f32.xlu1 %v379_v49  ;;  %v368_v52 = vadd.f32 %v566_v48, %v367_v50 }
  0x58   : > { %v369_v53 = vadd.f32 %v568_v51, %v368_v52 }
  0x5a   : > { %370 = vadd.xlane.f32.xlu0 %v369_v53 }
  0xd7   : > { %v376_v54 = vpop.xlane.xlu1 %375 }
  0xd8   : > { %v384_v55 = vmul.f32 0.24933892, %v376_v54 }
  0xda   : > { %389 = vst.msk [vmem:[%s151_s17 + $0x10] sm:$0xff] %vm386_vm0, %v384_v55  ;;  %v366_v56 = vpop.xlane.xlu0 %365 }
  0xdb   : > { %v382_v57 = vmul.f32 0.24933892, %v366_v56 }
  0xdd   : > { %387 = vst.msk [vmem:[%s151_s17] sm:$0xff] %vm386_vm0, %v382_v57 }
  0xdf   : > { %v381_v58 = vpop.xlane.xlu1 %380 }
  0xe0   : > { %v385_v59 = vmul.f32 0.24933892, %v381_v58 }
  0xe2   : > { %390 = vst.msk [vmem:[%s151_s17 + $0x18] sm:$0xff] %vm386_vm0, %v385_v59 }
  0xe3   : > { %v371_v60 = vpop.xlane.xlu0 %370 }
  0xe4   : > { %v383_v61 = vmul.f32 0.24933892, %v371_v60 }
  0xe6   : > { %388 = vst.msk [vmem:[%s151_s17 + $0x8] sm:$0xff] %vm386_vm0, %v383_v61 }
  0xe7 PF: > { %s14_s11 = sadd.s32 1, %s647_s11   ;;  %s765_s6 = smov %s631_s7 }
  0xe8   : > { %p11_p8 = scmp.ge.s32.totalorder %s14_s11, 4   ;;  %s766_s7 = smov %s635_s8 }
  0xe9   : > { %s767_s8 = smov %s709_s18  ;;  %s768_s9 = smov %s643_s10 }
  0xea   : > { %s769_s10 = smov %s771_s13  ;;  %13 = sbr.rel (!%p11_p8) target bundleno = 4 (0x4), region = 72 }
  0xef   :  { %412 = vsyncpa [#allocation4], 1 }
  0xf0   :  { %414 = vsyncpa [#allocation4 + $0x1], 1 }

</bundles_post_ra>
